<compile_context>
chip_gen: v7x
topology: tpu7x:2x2x1
jax: 0.10.0
libtpu: 0.0.40
codegen_flags: <defaults>
</compile_context>

<pallas_src>
import jax
import jax.numpy as jnp
from jax import lax
from jax.experimental import pallas as pl
from jax.experimental.pallas import tpu as pltpu


_VMEM_WHOLE_ARRAY_BUDGET = 12 * 1024 * 1024  # conservative vs v5e 16 MiB scoped default
_FLATTEN_MAX_ROWS = 256                      # max B*N per call for the one-matmul path


# --------------------------------------------------------------------------- #
# Kernels
# --------------------------------------------------------------------------- #
def gram_kernel(x_ref, o_ref):
    # X @ X^T via a contraction on dim 1 of both operands — no materialized
    # transpose, straight to the MXU with f32 accumulation.
    x = x_ref[...]                                   # (N, D) f32 tile in VMEM
    o_ref[...] = lax.dot_general(
        x, x,
        dimension_numbers=(((1,), (1,)), ((), ())),
        preferred_element_type=jnp.float32,
    )


def gram_tile_kernel(xi_ref, xj_ref, o_ref):
    # One (tm, tn) output tile of X @ X^T; D kept whole in the contraction.
    o_ref[...] = lax.dot_general(
        xi_ref[...], xj_ref[...],
        dimension_numbers=(((1,), (1,)), ((), ())),
        preferred_element_type=jnp.float32,
    )
    # TODO(synk): at scale exploit symmetry (compute j>=i tiles only and mirror
    # the transposed tile via the free XLU slot).


def flat_batched_gram_kernel(xf_ref, o_ref):
    # xf_ref: (BB*N, D) flattened node features for BB graphs; o_ref: (BB, N, N).
    # One MXU pass for the whole chunk, then copy the BB diagonal (N, N) blocks.
    bb, n, _ = o_ref.shape
    xf = xf_ref[...]
    g = lax.dot_general(
        xf, xf,
        dimension_numbers=(((1,), (1,)), ((), ())),
        preferred_element_type=jnp.float32,
    )
    for i in range(bb):                              # static loop, static slices
        o_ref[i, :, :] = g[i * n:(i + 1) * n, i * n:(i + 1) * n]


def batched_gram_kernel(x_ref, o_ref):
    # Fallback for large per-call chunks (B*N too big to flatten): one matmul
    # per graph, batched over the leading dim.
    x = x_ref[...]                                   # (BB, N, D)
    o_ref[...] = lax.dot_general(
        x, x,
        dimension_numbers=(((2,), (2,)), ((0,), (0,))),
        preferred_element_type=jnp.float32,
    )
    # NOTE: if N ever grows to >=128, make the written last dim a multiple of
    # 128 (lane-dense unmasked vst); at N=12 the masked-store cost is noise.


# --------------------------------------------------------------------------- #
# Wrappers
# --------------------------------------------------------------------------- #
def _tensorcores_per_chip():
    """2 where one device exposes two TensorCores (v7x, v4 megacore); else 1."""
    try:
        kind = jax.devices()[0].device_kind.lower()
    except Exception:
        return 1
    return 2 if ("v7" in kind or "7x" in kind or "v4" in kind) else 1


def _gram_whole_array(x):
    n, d = x.shape
    return pl.pallas_call(
        gram_kernel,
        out_shape=jax.ShapeDtypeStruct((n, n), jnp.float32),
        in_specs=[pl.BlockSpec(memory_space=pltpu.MemorySpace.VMEM)],
        out_specs=pl.BlockSpec(memory_space=pltpu.MemorySpace.VMEM),
        compiler_params=pltpu.CompilerParams(allow_input_fusion=[True]),
        cost_estimate=pl.CostEstimate(
            flops=2 * n * n * d, transcendentals=0,
            bytes_accessed=4 * (n * d + n * n)),
    )(x)


def _gram_tiled(x, tm, tn):
    n, d = x.shape
    return pl.pallas_call(
        gram_tile_kernel,
        out_shape=jax.ShapeDtypeStruct((n, n), jnp.float32),
        grid=(pl.cdiv(n, tm), pl.cdiv(n, tn)),
        in_specs=[pl.BlockSpec((tm, d), lambda i, j: (i, 0)),
                  pl.BlockSpec((tn, d), lambda i, j: (j, 0))],
        out_specs=pl.BlockSpec((tm, tn), lambda i, j: (i, j)),
        compiler_params=pltpu.CompilerParams(
            dimension_semantics=("parallel", "parallel"),
            allow_input_fusion=[True, True]),
        cost_estimate=pl.CostEstimate(
            flops=2 * n * n * d, transcendentals=0,
            bytes_accessed=4 * (2 * n * d + n * n)),
    )(x, x)


def graph_decoder_forward(x):
    """GraphDecoder.forward: returns x @ x.T, shape (N, N)."""
    n, d = x.shape
    if 4 * (n * d + n * n) <= _VMEM_WHOLE_ARRAY_BUDGET:
        # Gridless single invocation: whole arrays in VMEM, no per-step overhead.
        return _gram_whole_array(x)
    # Large-N fallback: lane-dense tiled grid (output tiles are 128-multiples).
    # 512 suits v6e/v7x; 128-multiples are already enough on v5e's 4x128^2 MXU.
    tm = tn = 512 if n % 512 == 0 else (256 if n % 256 == 0 else 128)
    return _gram_tiled(x, tm, tn)


def _batched_gram_call(xb, num_cores):
    b, n, d = xb.shape
    cost = pl.CostEstimate(
        flops=2 * b * n * n * d, transcendentals=0,
        bytes_accessed=4 * b * (n * d + n * n))
    # Split across TensorCores only where it exists (v7x) and the split keeps
    # block shapes legal; on v5e/v6e stay gridless (grid steps are pure cost).
    split = (num_cores > 1 and b % num_cores == 0
             and ((b // num_cores) * n) % 8 == 0)

    if b * n <= _FLATTEN_MAX_ROWS:
        # One-matmul path: (B*N, D) Gram, diagonal (N, N) blocks copied in-kernel.
        xf = xb.reshape(b * n, d)                    # free row-major reshape in XLA
        if split:
            bb = b // num_cores
            return pl.pallas_call(
                flat_batched_gram_kernel,
                out_shape=jax.ShapeDtypeStruct((b, n, n), jnp.float32),
                grid=(num_cores,),
                in_specs=[pl.BlockSpec((bb * n, d), lambda c: (c, 0))],
                out_specs=pl.BlockSpec((bb, n, n), lambda c: (c, 0, 0)),
                compiler_params=pltpu.CompilerParams(
                    dimension_semantics=("parallel",),
                    allow_input_fusion=[True]),
                cost_estimate=cost,
            )(xf)
        return pl.pallas_call(
            flat_batched_gram_kernel,
            out_shape=jax.ShapeDtypeStruct((b, n, n), jnp.float32),
            in_specs=[pl.BlockSpec(memory_space=pltpu.MemorySpace.VMEM)],
            out_specs=pl.BlockSpec(memory_space=pltpu.MemorySpace.VMEM),
            compiler_params=pltpu.CompilerParams(allow_input_fusion=[True]),
            cost_estimate=cost,
        )(xf)

    # Larger per-call chunks: batched contraction (one matmul per graph).
    if split:
        bb = b // num_cores
        return pl.pallas_call(
            batched_gram_kernel,
            out_shape=jax.ShapeDtypeStruct((b, n, n), jnp.float32),
            grid=(num_cores,),
            in_specs=[pl.BlockSpec((bb, n, d), lambda c: (c, 0, 0))],
            out_specs=pl.BlockSpec((bb, n, n), lambda c: (c, 0, 0)),
            compiler_params=pltpu.CompilerParams(
                dimension_semantics=("parallel",),
                allow_input_fusion=[True]),
            cost_estimate=cost,
        )(xb)
    return pl.pallas_call(
        batched_gram_kernel,
        out_shape=jax.ShapeDtypeStruct((b, n, n), jnp.float32),
        in_specs=[pl.BlockSpec(memory_space=pltpu.MemorySpace.VMEM)],
        out_specs=pl.BlockSpec(memory_space=pltpu.MemorySpace.VMEM),
        compiler_params=pltpu.CompilerParams(allow_input_fusion=[True]),
        cost_estimate=cost,
    )(xb)


def graph_decoder_forward_batched(xb, num_cores=None):
    """Batched forward: (B, N, D) -> (B, N, N), few big pallas_calls for the batch."""
    b, n, d = xb.shape
    if num_cores is None:
        num_cores = _tensorcores_per_chip()
    per_graph_bytes = 4 * (n * d + n * n)
    max_graphs = max(1, _VMEM_WHOLE_ARRAY_BUDGET // per_graph_bytes)
    if b <= max_graphs:
        return _batched_gram_call(xb, num_cores)
    # VMEM guard for very large batches: fewest, largest chunks — each chunk
    # still covers many graphs (never one grid step per graph).
    chunk = max(1, (max_graphs // max(num_cores, 1)) * max(num_cores, 1))
    outs = [_batched_gram_call(xb[s:s + chunk], num_cores)
            for s in range(0, b, chunk)]
    return jnp.concatenate(outs, axis=0)


def init_graph_decoder_params(hidden_dim, key):
    """Deterministic init of fc = Linear(hidden_dim, 1) (unused in forward)."""
    k_w, k_b = jax.random.split(key)
    bound = 1.0 / jnp.sqrt(hidden_dim)
    fc_weight = jax.random.uniform(
        k_w, (1, hidden_dim), jnp.float32, minval=-bound, maxval=bound)
    fc_bias = jax.random.uniform(
        k_b, (1,), jnp.float32, minval=-bound, maxval=bound)
    # TODO(synk): fc is never applied in GraphDecoder.forward; parameters kept
    # only to mirror the module's __init__.
    return {"fc_weight": fc_weight, "fc_bias": fc_bias}


if __name__ == "__main__":
    num_nodes = 12
    input_dim = 4
    hidden_dim = 32
    batch = 8

    key = jax.random.PRNGKey(0)
    k_x, k_xb, k_p = jax.random.split(key, 3)

    # Matches `x = torch.rand((num_nodes, input_dim))` (uniform [0, 1), f32).
    x = jax.random.uniform(k_x, (num_nodes, input_dim), jnp.float32)
    xb = jax.random.uniform(k_xb, (batch, num_nodes, input_dim), jnp.float32)

    _params = init_graph_decoder_params(hidden_dim, k_p)

    # Single-graph forward (the module's exact semantics).
    out = jax.block_until_ready(graph_decoder_forward(x))
    ref = x @ x.T
    assert out.shape == (num_nodes, num_nodes)
    assert jnp.allclose(out, ref, atol=1e-5, rtol=1e-5)

    # Batched forward (amortizes launch/DMA overhead over many graphs;
    # one MXU pass per call via the flattened Gram).
    out_b = jax.block_until_ready(graph_decoder_forward_batched(xb))
    ref_b = jnp.einsum("bnd,bmd->bnm", xb, xb)
    assert out_b.shape == (batch, num_nodes, num_nodes)
    assert jnp.allclose(out_b, ref_b, atol=1e-5, rtol=1e-5)

    print("KERNEL_OK")
</pallas_src>

<mosaic_0001>
module attributes {stable_mosaic.version = 11 : i64} {
  func.func @gram_kernel(%arg0: memref<12x4xf32, #tpu.memory_space<vmem>>, %arg1: memref<12x12xf32, #tpu.memory_space<vmem>>) attributes {dimension_semantics = [], scalar_prefetch = 0 : i64, scratch_operands = 0 : i64, tpu.core_type = #tpu.core_type<tc>} {
    %c0 = arith.constant 0 : index
    %c0_0 = arith.constant 0 : index
    %0 = vector.load %arg0[%c0, %c0_0] : memref<12x4xf32, #tpu.memory_space<vmem>>, vector<12x4xf32>
    %cst = arith.constant dense<0.000000e+00> : vector<12x12xf32>
    %1 = tpu.matmul %0, %0, %cst {dimension_numbers = #tpu.dot_dimension_numbers<[1], [1], [0], [0], [0, 0, 1, 0], [], []>} : vector<12x4xf32>, vector<12x4xf32>, vector<12x12xf32> -> vector<12x12xf32>
    %c0_1 = arith.constant 0 : index
    %c0_2 = arith.constant 0 : index
    %2 = vector.load %arg1[%c0_1, %c0_2] : memref<12x12xf32, #tpu.memory_space<vmem>>, vector<12x12xf32>
    tpu.vector_store %arg1[%c0_1, %c0_2], %1 {strides = array<i32>} : memref<12x12xf32, #tpu.memory_space<vmem>>, vector<12x12xf32>,
    return
  }
}

</mosaic_0001>

<bundles_post_ra>
// kernel: tpu_custom_call.1
= control target key start
LH: loop header
LB: loop body
LE: loop exit
PB: predicated region body
PF: predicated region fallthrough
CT: control target
= control target key end

     0   :  { %vm11_vm0 = vcmask 31744   ;;  %s192_s0 = inlined_call_operand.vmem [shape: f32[12,4], index: 0, kind: input, shape index: {}]   ;;  %s193_s1 = inlined_call_operand.hbm [shape: f32[12,12], index: 1, kind: output, shape index: {}]  }
   0x1   :  { %v9_v0 = vld [vmem:[%s192_s0] sm:$0xff]  ;;  %v10_v1 = vld [vmem:[%s192_s0 + $0x8] sm:$0xf] }
   0x2   :  { %6 = vsyncpa [#allocation3], 0  ;;  %v128_v2 = vpack.c.bf16 %v10_v1, %v9_v0  ;;  %125 = vmatprep.mubr.msk.f32.mxu0 %vm11_vm0, %v9_v0  ;;  %s161_s10 = smov [#allocation2]   ;;  %vm95_vm2 = vcmask 93184   ;;  %vm93_vm3 = vcmask 97280  }
   0x3   :  { %vm129_vm1 = vmpackc.low %vm11_vm0, %vm11_vm0  ;;  %s102_s11 = sshll.u32 %s161_s10, 4  ;;  %s103_s11 = int_to_ptr.vmem [resolvable:$true] %s102_s11 }
   0x4   :  { %130 = vmatprep.subr.msk.bf16.mxu0 %vm129_vm1, %v128_v2  ;;  %s137_s12 = scalar_lea.vmem %s103_s11, 256  ;;  %p142_p1 = scmp.lt.s32.totalorder %s103_s11, %s103_s11 }
   0x5   :  { %133 = vmatpush3.bf16.xpose.msk.msra.mxu0 %vm129_vm1, %v128_v2  ;;  %p138_p0 = scmp.ne.s32.totalorder %s103_s11, %s137_s12  ;;  %p143_p2 = scmp.lt.s32.totalorder %s137_s12, %s137_s12 }
   0x7   :  { %p144_p3 = por %p143_p2, %p142_p1 }
   0x9   :  { %p145_p4 = pnand %p144_p3, %p138_p0 }
   0xc   :  { %126 = vmatmul.mubr.msk.f32.vlgmr.msra.gmra.mrb[0].mxu0 %vm11_vm0, %v10_v1 }
  0xdf   :  { %v127_v3 = vpop.f32.mrb[0].mxu0 }
  0xe0   :  { %96 = vst.msk [vmem:[#allocation2 + $0x8] sm:$0xf] %vm95_vm2, %v127_v3  ;;  %v84_v4 = vpop.f32.mrb[1].mxu0 }
  0xe1   :  { %94 = vst.msk [vmem:[#allocation2] sm:$0xff] %vm93_vm3, %v84_v4 }
  0xe2   :  { %148 = shalt.err (!%p145_p4)
}
  0xe3   :  { %s149_s14 = scalar_lea.hbm %s193_s1, 256 }
  0xe4   :  { %p150_p5 = scmp.ne.s32.totalorder %s193_s1, %s149_s14  ;;  %p153_p6 = scmp.lt.u32.totalorder %s149_s14, %s193_s1 }
  0xe6   :  { %p155_p7 = pnand %p153_p6, %p150_p5 }
  0xe8   :  { %158 = shalt.err (!%p155_p7)
}
  0xe9   :  { %s162_s19 = smov 128   ;;  %s163_s20 = smov 8  }
  0xea   :  { %108 = dma.vmem_to_hbm [thread:$0]  %s103_s11, 256, %s193_s1, [#allocation3], %s162_s19, %s162_s19, %s163_s20  }
  0xeb   :  { %159 = dma.done.wait [#allocation3], 256  }
  0xec   :  { %160 = vsyncadd [#allocation3], 4294967040 }
  0xed   :  { %112 = vsyncpa [#allocation3], 1 }

</bundles_post_ra>
